<compile_context>
chip_gen: v7x
topology: tpu7x:2x2x1
jax: 0.10.0
libtpu: 0.0.40
codegen_flags: <defaults>
</compile_context>

<pallas_src>
import functools

import jax
import jax.numpy as jnp
from jax.experimental import pallas as pl
from jax.experimental.pallas import tpu as pltpu


def decoder_step_kernel(zcat_ref, c0_ref, w_ref, b_ref, enc_ref, out_ref,
                        state_sc, ml_sc):
    """One decode step: fused LSTM cell + online-softmax attention over enc tiles.

    Grid: (batch_tiles, s_tiles); axis 1 (source positions) is the softmax
    reduction.  enc_ref holds a lane-dense [tb, H, ts] tile (positions on
    lanes).  state_sc packs [ctx_acc | h | c | pad] into one lane-dense
    [tb, OW] scratch; ml_sc packs the running softmax max/sum as [tb, 2].
    """
    H = c0_ref.shape[-1]
    tb, OW = out_ref.shape
    k = pl.program_id(1)

    # ---- LSTM cell + accumulator init: once per batch tile (first S tile) ----
    @pl.when(k == 0)
    def _lstm_and_init():
        # Single fused MXU pass for all four gates: [tb, E+H] @ [E+H, 4H].
        z = jnp.dot(zcat_ref[...], w_ref[...],
                    preferred_element_type=jnp.float32) + b_ref[...]
        i_g = jax.nn.sigmoid(z[:, 0 * H:1 * H])       # PyTorch gate order i,f,g,o
        f_g = jax.nn.sigmoid(z[:, 1 * H:2 * H])
        g_g = jnp.tanh(z[:, 2 * H:3 * H])
        o_g = jax.nn.sigmoid(z[:, 3 * H:4 * H])
        c_new = f_g * c0_ref[...] + i_g * g_g
        h_new = o_g * jnp.tanh(c_new)
        state_sc[:, 0:H] = jnp.zeros((tb, H), jnp.float32)        # context acc
        state_sc[:, H:2 * H] = h_new
        state_sc[:, 2 * H:3 * H] = c_new
        if OW > 3 * H:                                            # trace-time branch
            state_sc[:, 3 * H:OW] = jnp.zeros((tb, OW - 3 * H), jnp.float32)
        ml_sc[:, 0:1] = jnp.full((tb, 1), -jnp.inf, jnp.float32)  # running max
        ml_sc[:, 1:2] = jnp.zeros((tb, 1), jnp.float32)           # running sum

    # ---- Online-softmax attention over this enc tile (MXU contractions) ----
    enc = enc_ref[...]                                        # [tb, H, ts]
    h3 = state_sc[:, H:2 * H][:, None, :].astype(enc.dtype)   # [tb, 1, H]
    s = jnp.einsum('bqh,bhs->bqs', h3, enc,
                   preferred_element_type=jnp.float32)[:, 0, :]    # [tb, ts]

    m_prev = ml_sc[:, 0:1]
    m_new = jnp.maximum(m_prev, jnp.max(s, axis=-1, keepdims=True))
    alpha = jnp.exp(m_prev - m_new)                           # rescale old stats
    p = jnp.exp(s - m_new)                                    # [tb, ts]
    ml_sc[:, 1:2] = alpha * ml_sc[:, 1:2] + jnp.sum(p, axis=-1, keepdims=True)
    ml_sc[:, 0:1] = m_new
    # TODO(synk): with q=1 this runs the MXU at M=1; batch decode positions
    #             per call once enc is VMEM-resident across steps.
    ctx = jnp.einsum('bhs,bsq->bhq', enc, p[:, :, None].astype(enc.dtype),
                     preferred_element_type=jnp.float32)[:, :, 0]   # [tb, H]
    state_sc[:, 0:H] = alpha * state_sc[:, 0:H] + ctx

    # ---- Finalize: single unmasked full-width store [tb, OW] ----
    @pl.when(k == pl.num_programs(1) - 1)
    def _finalize():
        inv_l = pl.reciprocal(ml_sc[:, 1:2], approx=False)    # exact; off hot path
        lane = jax.lax.broadcasted_iota(jnp.int32, (tb, OW), 1)
        scale = jnp.where(lane < H, inv_l, 1.0)               # normalize ctx lanes only
        out_ref[...] = (state_sc[...] * scale).astype(out_ref.dtype)


def prepare_decoder_inputs(params, enc_out, matmul_dtype=jnp.bfloat16):
    """Per-decode-sequence prep (hoisted out of the per-token step):
      * cast the fused LSTM weight to the matmul dtype once,
      * re-layout enc_out [B,S,H] -> lane-dense [B,H,S] and cast once, so the
        dominant HBM stream is narrow-typed and every enc tile is lane-dense.

    params = (emb_table [V,E], w_fused [E+H,4H], b_fused [1,4H]) where, vs
    PyTorch's LSTM,
      w_fused = concat([weight_ih_l0.T, weight_hh_l0.T], axis=0)
      b_fused = (bias_ih_l0 + bias_hh_l0)[None, :]
    with gate order (i, f, g, o).
    """
    emb_table, w_fused, b_fused = params
    return (emb_table,
            w_fused.astype(matmul_dtype),
            b_fused.astype(jnp.float32),
            jnp.swapaxes(enc_out, 1, 2).astype(matmul_dtype))


def decoder_step(prepped, x, start, *, s_block=2048, b_block=None,
                 enc_buffers=None):
    """One decode step of Decoder.forward (seq-len-1 input, squeeze(1) path).

    x: int32 [B, 1]; start = (h0, c0), each [1, B, H];
    prepped = prepare_decoder_inputs(params, enc_out, matmul_dtype).
    Returns (out [B, 2H] f32, (h_n [1,B,H] f32, c_n [1,B,H] f32)).
    """
    emb_table, w_fused, b_fused, enc_t = prepped
    h0, c0 = start
    B, T = x.shape
    assert T == 1, "decoder step kernel assumes seq length 1 (matches squeeze(1))"
    H = h0.shape[-1]
    E = emb_table.shape[-1]
    assert enc_t.shape[0] == B and enc_t.shape[1] == H
    S = enc_t.shape[2]
    matmul_dtype = w_fused.dtype
    assert H % 8 == 0

    # Glue: embedding gather + fused-gate input concat (tiny; stays in XLA).
    embeds = jnp.take(emb_table, x[:, 0], axis=0)             # [B, E]
    zcat = jnp.concatenate([embeds, h0[0]], axis=1).astype(matmul_dtype)
    c0_f = c0[0].astype(jnp.float32)

    # ---- Tile sizes ------------------------------------------------------
    # Batch axis: keep >= 2 tiles when possible so the "parallel" grid axis
    # can be sharded across v7x's two TensorCores.
    sub = 16 if jnp.dtype(matmul_dtype) == jnp.dtype(jnp.bfloat16) else 8
    if b_block is None:
        tb = B // 2 if (B % 2 == 0 and (B // 2) % sub == 0) else B
    else:
        tb = min(b_block, B)
        assert B % tb == 0, "b_block must divide B"
        assert tb == B or tb % sub == 0, (
            "tiled batch blocks must be a multiple of %d for %s" % (sub, matmul_dtype))
    # Source axis: big tiles amortize per-grid-step overhead (128 MiB VMEM on
    # v5e/v6e); the explicit VMEM budget below keeps v7x's 64 MiB respected.
    if S <= s_block:
        ts = S
    else:
        ts = s_block
        assert S % ts == 0 and ts % 128 == 0, (
            "s_block must divide S and be a multiple of 128 (lane-dense enc tiles)")
    grid = (B // tb, S // ts)

    out_width = ((3 * H + 127) // 128) * 128                  # lane-dense output

    # ---- Explicit VMEM budget (sized against v7x's 64 MiB physical VMEM) ----
    itemsize = jnp.dtype(matmul_dtype).itemsize
    n_buf = 2 if enc_buffers is None else enc_buffers
    enc_bytes = n_buf * tb * H * ts * itemsize
    other_bytes = 2 * (tb * (E + H) * itemsize + tb * H * 4
                       + (E + H) * 4 * H * itemsize + 4 * H * 4
                       + tb * out_width * 4)
    scratch_bytes = (tb * out_width + tb * 128) * 4
    vmem_limit = int(min(64 << 20,
                         max(32 << 20,
                             2 * (enc_bytes + other_bytes + scratch_bytes))))

    enc_index = lambda bi, k: (bi, 0, k)
    if enc_buffers is None:
        enc_spec = pl.BlockSpec((tb, H, ts), enc_index)
    else:
        # Deeper pipelining of the enc stream (sweep 2-4; mainly helps v5e).
        enc_spec = pl.BlockSpec((tb, H, ts), enc_index,
                                pipeline_mode=pl.Buffered(enc_buffers))

    packed = pl.pallas_call(
        decoder_step_kernel,
        grid_spec=pltpu.PrefetchScalarGridSpec(
            num_scalar_prefetch=0,
            grid=grid,
            in_specs=[
                pl.BlockSpec((tb, E + H), lambda bi, k: (bi, 0)),     # zcat
                pl.BlockSpec((tb, H), lambda bi, k: (bi, 0)),         # c0
                pl.BlockSpec((E + H, 4 * H), lambda bi, k: (0, 0)),   # W_fused
                pl.BlockSpec((1, 4 * H), lambda bi, k: (0, 0)),       # b_fused
                enc_spec,                                             # enc tile
            ],
            out_specs=pl.BlockSpec((tb, out_width), lambda bi, k: (bi, 0)),
            scratch_shapes=[
                pltpu.VMEM((tb, out_width), jnp.float32),  # [ctx_acc|h|c|pad]
                pltpu.VMEM((tb, 2), jnp.float32),          # [running max|sum]
            ]),
        out_shape=jax.ShapeDtypeStruct((B, out_width), jnp.float32),
        compiler_params=pltpu.CompilerParams(
            dimension_semantics=("parallel", "arbitrary"),
            vmem_limit_bytes=vmem_limit),
    )(zcat, c0_f, w_fused, b_fused, enc_t)

    context = packed[:, 0:H]
    h_new = packed[:, H:2 * H]
    c_new = packed[:, 2 * H:3 * H]
    all_out = jnp.concatenate([context, h_new], axis=1)       # [B, 2H]
    hid = (h_new[None, :, :], c_new[None, :, :])              # ([1,B,H],[1,B,H])
    return all_out, hid


def reference_forward(params, x, start, enc_out):
    """Pure-JAX reference of the same math (mirrors PyTorch Decoder.forward)."""
    emb_table, w_fused, b_fused = params
    h0, c0 = start
    H = h0.shape[-1]
    embeds = jnp.take(emb_table, x[:, 0], axis=0)
    zcat = jnp.concatenate([embeds, h0[0]], axis=1)
    z = zcat @ w_fused + b_fused
    i_g = jax.nn.sigmoid(z[:, 0 * H:1 * H])
    f_g = jax.nn.sigmoid(z[:, 1 * H:2 * H])
    g_g = jnp.tanh(z[:, 2 * H:3 * H])
    o_g = jax.nn.sigmoid(z[:, 3 * H:4 * H])
    c_new = f_g * c0[0] + i_g * g_g
    h_new = o_g * jnp.tanh(c_new)

    all_out = h_new[:, None, :]                               # [B, 1, H]
    temp = jnp.einsum('bth,bsh->bts', all_out, enc_out)
    align = jax.nn.softmax(temp, axis=-1)
    context = jnp.einsum('bts,bsh->bth', align, enc_out)
    out = jnp.concatenate([context[:, 0], all_out[:, 0]], axis=1)
    return out, (h_new[None], c_new[None])


if __name__ == "__main__":
    def make_case(key, B, S, E, H, VOCAB):
        ks = jax.random.split(key, 8)
        emb_table = jax.random.normal(ks[0], (VOCAB, E), jnp.float32) * 0.1
        w_fused = jax.random.normal(ks[1], (E + H, 4 * H), jnp.float32) * 0.1
        b_fused = jax.random.normal(ks[2], (1, 4 * H), jnp.float32) * 0.1
        params = (emb_table, w_fused, b_fused)
        x = jax.random.randint(ks[4], (B, 1), 0, VOCAB, jnp.int32)
        h0 = jax.random.normal(ks[5], (1, B, H), jnp.float32) * 0.1
        c0 = jax.random.normal(ks[6], (1, B, H), jnp.float32) * 0.1
        enc_out = jax.random.normal(ks[7], (B, S, H), jnp.float32)
        return params, x, (h0, c0), enc_out

    def check(params, x, start, enc_out, *, matmul_dtype, s_block, atol, rtol):
        B = x.shape[0]
        H = start[0].shape[-1]
        # Cast/transpose of enc + weight cast hoisted out of the per-step call.
        prepped = prepare_decoder_inputs(params, enc_out, matmul_dtype)
        step = jax.jit(functools.partial(decoder_step, s_block=s_block))
        out, (h_n, c_n) = step(prepped, x, start)
        out = jax.block_until_ready(out)
        h_n = jax.block_until_ready(h_n)
        c_n = jax.block_until_ready(c_n)

        out_ref, (h_ref, c_ref) = reference_forward(params, x, start, enc_out)
        assert out.shape == (B, 2 * H)
        assert h_n.shape == (1, B, H) and c_n.shape == (1, B, H)
        assert jnp.allclose(out, out_ref, atol=atol, rtol=rtol)
        assert jnp.allclose(h_n, h_ref, atol=atol, rtol=rtol)
        assert jnp.allclose(c_n, c_ref, atol=atol, rtol=rtol)

    key = jax.random.PRNGKey(0)
    k_small, k_med = jax.random.split(key)

    # --- small case (B=2, S=8, E=16, H=32): single grid step -------------
    small = make_case(k_small, B=2, S=8, E=16, H=32, VOCAB=64)
    check(*small, matmul_dtype=jnp.float32, s_block=2048, atol=1e-4, rtol=1e-4)
    check(*small, matmul_dtype=jnp.bfloat16, s_block=2048, atol=5e-2, rtol=5e-2)

    # --- medium case (B=16, S=256): exercises batch tiling (tb=B//2 for the
    #     f32 path -> 2 "parallel" tiles) and the multi-tile online softmax.
    med = make_case(k_med, B=16, S=256, E=16, H=32, VOCAB=64)
    check(*med, matmul_dtype=jnp.float32, s_block=128, atol=1e-4, rtol=1e-4)
    check(*med, matmul_dtype=jnp.bfloat16, s_block=128, atol=5e-2, rtol=5e-2)

    print("KERNEL_OK")
</pallas_src>

<mosaic_0001>
module attributes {stable_mosaic.version = 11 : i64} {
  func.func @decoder_step_kernel(%arg0: i32, %arg1: i32, %arg2: memref<2x48xf32, #tpu.memory_space<vmem>>, %arg3: memref<2x32xf32, #tpu.memory_space<vmem>>, %arg4: memref<48x128xf32, #tpu.memory_space<vmem>>, %arg5: memref<1x128xf32, #tpu.memory_space<vmem>>, %arg6: memref<2x32x8xf32, #tpu.memory_space<vmem>>, %arg7: memref<2x128xf32, #tpu.memory_space<vmem>>, %arg8: memref<2x128xf32, #tpu.memory_space<vmem>>, %arg9: memref<2x2xf32, #tpu.memory_space<vmem>>) attributes {dimension_semantics = [#tpu.dimension_semantics<parallel>, #tpu.dimension_semantics<arbitrary>], iteration_bounds = array<i64: 1, 1>, scalar_prefetch = 0 : i64, scratch_operands = 2 : i64, tpu.core_type = #tpu.core_type<tc>, window_params = [{transform_indices = @transform_0, window_bounds = array<i64: 2, 48>}, {transform_indices = @transform_1, window_bounds = array<i64: 2, 32>}, {pipeline_mode = #tpu.pipeline_mode<synchronous>, transform_indices = @transform_2, window_bounds = array<i64: 48, 128>}, {pipeline_mode = #tpu.pipeline_mode<synchronous>, transform_indices = @transform_3, window_bounds = array<i64: 1, 128>}, {transform_indices = @transform_4, window_bounds = array<i64: 2, 32, 8>}, {transform_indices = @transform_5, window_bounds = array<i64: 2, 128>}]} {
    %c0_i32 = arith.constant 0 : i32
    %0 = arith.cmpi eq, %arg1, %c0_i32 : i32
    %1 = arith.extui %0 : i1 to i32
    %c0_i32_0 = arith.constant 0 : i32
    %2 = arith.cmpi ne, %1, %c0_i32_0 : i32
    scf.if %2 {
      %c0_20 = arith.constant 0 : index
      %c0_21 = arith.constant 0 : index
      %35 = vector.load %arg2[%c0_20, %c0_21] : memref<2x48xf32, #tpu.memory_space<vmem>>, vector<2x48xf32>
      %c0_22 = arith.constant 0 : index
      %c0_23 = arith.constant 0 : index
      %36 = vector.load %arg4[%c0_22, %c0_23] : memref<48x128xf32, #tpu.memory_space<vmem>>, vector<48x128xf32>
      %cst_24 = arith.constant dense<0.000000e+00> : vector<2x128xf32>
      %37 = tpu.matmul %35, %36, %cst_24 {dimension_numbers = #tpu.dot_dimension_numbers<[1], [0], [0], [1], [0, 0, 1, 1], [], []>} : vector<2x48xf32>, vector<48x128xf32>, vector<2x128xf32> -> vector<2x128xf32>
      %c0_25 = arith.constant 0 : index
      %c0_26 = arith.constant 0 : index
      %38 = vector.load %arg5[%c0_25, %c0_26] : memref<1x128xf32, #tpu.memory_space<vmem>>, vector<1x128xf32>
      %39 = vector.broadcast %38 : vector<1x128xf32> to vector<2x128xf32>
      %40 = arith.addf %37, %39 : vector<2x128xf32>
      %41 = vector.extract_strided_slice %40 {offsets = [0, 0], sizes = [2, 32], strides = [1, 1]} : vector<2x128xf32> to vector<2x32xf32>
      %42 = arith.negf %41 : vector<2x32xf32>
      %43 = math.exp %42 : vector<2x32xf32>
      %cst_27 = arith.constant 1.000000e+00 : f32
      %44 = vector.broadcast %cst_27 : f32 to vector<2x32xf32>
      %45 = arith.addf %44, %43 : vector<2x32xf32>
      %46 = arith.divf %44, %45 : vector<2x32xf32>
      %47 = vector.extract_strided_slice %40 {offsets = [0, 32], sizes = [2, 32], strides = [1, 1]} : vector<2x128xf32> to vector<2x32xf32>
      %48 = arith.negf %47 : vector<2x32xf32>
      %49 = math.exp %48 : vector<2x32xf32>
      %cst_28 = arith.constant 1.000000e+00 : f32
      %50 = vector.broadcast %cst_28 : f32 to vector<2x32xf32>
      %51 = arith.addf %50, %49 : vector<2x32xf32>
      %52 = arith.divf %50, %51 : vector<2x32xf32>
      %53 = vector.extract_strided_slice %40 {offsets = [0, 64], sizes = [2, 32], strides = [1, 1]} : vector<2x128xf32> to vector<2x32xf32>
      %54 = math.tanh %53 : vector<2x32xf32>
      %55 = vector.extract_strided_slice %40 {offsets = [0, 96], sizes = [2, 32], strides = [1, 1]} : vector<2x128xf32> to vector<2x32xf32>
      %56 = arith.negf %55 : vector<2x32xf32>
      %57 = math.exp %56 : vector<2x32xf32>
      %cst_29 = arith.constant 1.000000e+00 : f32
      %58 = vector.broadcast %cst_29 : f32 to vector<2x32xf32>
      %59 = arith.addf %58, %57 : vector<2x32xf32>
      %60 = arith.divf %58, %59 : vector<2x32xf32>
      %c0_30 = arith.constant 0 : index
      %c0_31 = arith.constant 0 : index
      %61 = vector.load %arg3[%c0_30, %c0_31] : memref<2x32xf32, #tpu.memory_space<vmem>>, vector<2x32xf32>
      %62 = arith.mulf %52, %61 : vector<2x32xf32>
      %63 = arith.mulf %46, %54 : vector<2x32xf32>
      %64 = arith.addf %62, %63 : vector<2x32xf32>
      %65 = math.tanh %64 : vector<2x32xf32>
      %66 = arith.mulf %60, %65 : vector<2x32xf32>
      %cst_32 = arith.constant 0.000000e+00 : f32
      %67 = vector.broadcast %cst_32 : f32 to vector<2x32xf32>
      %c0_33 = arith.constant 0 : index
      %c0_34 = arith.constant 0 : index
      %68 = vector.load %arg8[%c0_33, %c0_34] : memref<2x128xf32, #tpu.memory_space<vmem>>, vector<2x32xf32>
      tpu.vector_store %arg8[%c0_33, %c0_34], %67 {strides = array<i32>} : memref<2x128xf32, #tpu.memory_space<vmem>>, vector<2x32xf32>,
      %c0_35 = arith.constant 0 : index
      %c32_36 = arith.constant 32 : index
      %69 = vector.load %arg8[%c0_35, %c32_36] : memref<2x128xf32, #tpu.memory_space<vmem>>, vector<2x32xf32>
      tpu.vector_store %arg8[%c0_35, %c32_36], %66 {strides = array<i32>} : memref<2x128xf32, #tpu.memory_space<vmem>>, vector<2x32xf32>,
      %c0_37 = arith.constant 0 : index
      %c64 = arith.constant 64 : index
      %70 = vector.load %arg8[%c0_37, %c64] : memref<2x128xf32, #tpu.memory_space<vmem>>, vector<2x32xf32>
      tpu.vector_store %arg8[%c0_37, %c64], %64 {strides = array<i32>} : memref<2x128xf32, #tpu.memory_space<vmem>>, vector<2x32xf32>,
      %cst_38 = arith.constant 0.000000e+00 : f32
      %71 = vector.broadcast %cst_38 : f32 to vector<2x32xf32>
      %c0_39 = arith.constant 0 : index
      %c96 = arith.constant 96 : index
      %72 = vector.load %arg8[%c0_39, %c96] : memref<2x128xf32, #tpu.memory_space<vmem>>, vector<2x32xf32>
      tpu.vector_store %arg8[%c0_39, %c96], %71 {strides = array<i32>} : memref<2x128xf32, #tpu.memory_space<vmem>>, vector<2x32xf32>,
      %cst_40 = arith.constant 0xFF800000 : f32
      %73 = vector.broadcast %cst_40 : f32 to vector<2x1xf32>
      %c0_41 = arith.constant 0 : index
      %c0_42 = arith.constant 0 : index
      %74 = vector.load %arg9[%c0_41, %c0_42] : memref<2x2xf32, #tpu.memory_space<vmem>>, vector<2x1xf32>
      tpu.vector_store %arg9[%c0_41, %c0_42], %73 {strides = array<i32>} : memref<2x2xf32, #tpu.memory_space<vmem>>, vector<2x1xf32>,
      %cst_43 = arith.constant 0.000000e+00 : f32
      %75 = vector.broadcast %cst_43 : f32 to vector<2x1xf32>
      %c0_44 = arith.constant 0 : index
      %c1_45 = arith.constant 1 : index
      %76 = vector.load %arg9[%c0_44, %c1_45] : memref<2x2xf32, #tpu.memory_space<vmem>>, vector<2x1xf32>
      tpu.vector_store %arg9[%c0_44, %c1_45], %75 {strides = array<i32>} : memref<2x2xf32, #tpu.memory_space<vmem>>, vector<2x1xf32>,
    } else {
    }
    %c0 = arith.constant 0 : index
    %c0_1 = arith.constant 0 : index
    %c0_2 = arith.constant 0 : index
    %3 = vector.load %arg6[%c0, %c0_1, %c0_2] : memref<2x32x8xf32, #tpu.memory_space<vmem>>, vector<2x32x8xf32>
    %c0_3 = arith.constant 0 : index
    %c32 = arith.constant 32 : index
    %4 = vector.load %arg8[%c0_3, %c32] : memref<2x128xf32, #tpu.memory_space<vmem>>, vector<2x32xf32>
    %5 = vector.shape_cast %4 : vector<2x32xf32> to vector<2x1x32xf32>
    "tpu.trace_start"() <{level = 10 : i32, message = "bqh,bhs->bqs"}> : () -> ()
    %cst = arith.constant dense<0.000000e+00> : vector<2x1x8xf32>
    %6 = tpu.matmul %5, %3, %cst {dimension_numbers = #tpu.dot_dimension_numbers<[2], [1], [1], [2], [0, 0, 0, 1, 1, 2], [0], [0]>} : vector<2x1x32xf32>, vector<2x32x8xf32>, vector<2x1x8xf32> -> vector<2x1x8xf32>
    "tpu.trace_stop"() : () -> ()
    %7 = vector.shape_cast %6 : vector<2x1x8xf32> to vector<2x8xf32>
    %c0_4 = arith.constant 0 : index
    %c0_5 = arith.constant 0 : index
    %8 = vector.load %arg9[%c0_4, %c0_5] : memref<2x2xf32, #tpu.memory_space<vmem>>, vector<2x1xf32>
    %cst_6 = arith.constant dense<0xFF800000> : vector<2xf32>
    %9 = vector.multi_reduction <maximumf>, %7, %cst_6 [1] : vector<2x8xf32> to vector<2xf32>
    %10 = vector.shape_cast %9 : vector<2xf32> to vector<2x1xf32>
    %11 = arith.maximumf %8, %10 : vector<2x1xf32>
    %12 = arith.subf %8, %11 : vector<2x1xf32>
    %13 = math.exp %12 : vector<2x1xf32>
    %14 = vector.broadcast %11 : vector<2x1xf32> to vector<2x8xf32>
    %15 = arith.subf %7, %14 : vector<2x8xf32>
    %16 = math.exp %15 : vector<2x8xf32>
    %c0_7 = arith.constant 0 : index
    %c1 = arith.constant 1 : index
    %17 = vector.load %arg9[%c0_7, %c1] : memref<2x2xf32, #tpu.memory_space<vmem>>, vector<2x1xf32>
    %18 = arith.mulf %13, %17 : vector<2x1xf32>
    %cst_8 = arith.constant dense<0.000000e+00> : vector<2xf32>
    %19 = vector.multi_reduction <add>, %16, %cst_8 [1] : vector<2x8xf32> to vector<2xf32>
    %20 = vector.shape_cast %19 : vector<2xf32> to vector<2x1xf32>
    %21 = arith.addf %18, %20 : vector<2x1xf32>
    %c0_9 = arith.constant 0 : index
    %c1_10 = arith.constant 1 : index
    %22 = vector.load %arg9[%c0_9, %c1_10] : memref<2x2xf32, #tpu.memory_space<vmem>>, vector<2x1xf32>
    tpu.vector_store %arg9[%c0_9, %c1_10], %21 {strides = array<i32>} : memref<2x2xf32, #tpu.memory_space<vmem>>, vector<2x1xf32>,
    %c0_11 = arith.constant 0 : index
    %c0_12 = arith.constant 0 : index
    %23 = vector.load %arg9[%c0_11, %c0_12] : memref<2x2xf32, #tpu.memory_space<vmem>>, vector<2x1xf32>
    tpu.vector_store %arg9[%c0_11, %c0_12], %11 {strides = array<i32>} : memref<2x2xf32, #tpu.memory_space<vmem>>, vector<2x1xf32>,
    %24 = vector.shape_cast %16 : vector<2x8xf32> to vector<2x8x1xf32>
    "tpu.trace_start"() <{level = 10 : i32, message = "bhs,bsq->bhq"}> : () -> ()
    %cst_13 = arith.constant dense<0.000000e+00> : vector<2x32x1xf32>
    %25 = tpu.matmul %3, %24, %cst_13 {dimension_numbers = #tpu.dot_dimension_numbers<[2], [1], [1], [2], [0, 0, 0, 1, 1, 2], [0], [0]>} : vector<2x32x8xf32>, vector<2x8x1xf32>, vector<2x32x1xf32> -> vector<2x32x1xf32>
    "tpu.trace_stop"() : () -> ()
    %26 = vector.shape_cast %25 : vector<2x32x1xf32> to vector<2x32xf32>
    %c0_14 = arith.constant 0 : index
    %c0_15 = arith.constant 0 : index
    %27 = vector.load %arg8[%c0_14, %c0_15] : memref<2x128xf32, #tpu.memory_space<vmem>>, vector<2x32xf32>
    %28 = vector.broadcast %13 : vector<2x1xf32> to vector<2x32xf32>
    %29 = arith.mulf %28, %27 : vector<2x32xf32>
    %30 = arith.addf %29, %26 : vector<2x32xf32>
    %c0_16 = arith.constant 0 : index
    %c0_17 = arith.constant 0 : index
    %31 = vector.load %arg8[%c0_16, %c0_17] : memref<2x128xf32, #tpu.memory_space<vmem>>, vector<2x32xf32>
    tpu.vector_store %arg8[%c0_16, %c0_17], %30 {strides = array<i32>} : memref<2x128xf32, #tpu.memory_space<vmem>>, vector<2x32xf32>,
    %c0_i32_18 = arith.constant 0 : i32
    %32 = arith.cmpi eq, %arg1, %c0_i32_18 : i32
    %33 = arith.extui %32 : i1 to i32
    %c0_i32_19 = arith.constant 0 : i32
    %34 = arith.cmpi ne, %33, %c0_i32_19 : i32
    scf.if %34 {
      %c0_20 = arith.constant 0 : index
      %c1_21 = arith.constant 1 : index
      %35 = vector.load %arg9[%c0_20, %c1_21] : memref<2x2xf32, #tpu.memory_space<vmem>>, vector<2x1xf32>
      %36 = tpu.reciprocal %35 : vector<2x1xf32> -> vector<2x1xf32>
      %37 = tpu.iota {dimensions = array<i32: 1>} : vector<2x128xi32>
      %c32_i32 = arith.constant 32 : i32
      %38 = vector.broadcast %c32_i32 : i32 to vector<2x128xi32>
      %39 = arith.cmpi slt, %37, %38 : vector<2x128xi32>
      %cst_22 = arith.constant 1.000000e+00 : f32
      %40 = vector.shape_cast %36 : vector<2x1xf32> to vector<2x1xf32>
      %41 = vector.broadcast %40 : vector<2x1xf32> to vector<2x128xf32>
      %42 = vector.broadcast %cst_22 : f32 to vector<2x128xf32>
      %43 = arith.select %39, %41, %42 : vector<2x128xi1>, vector<2x128xf32>
      %c0_23 = arith.constant 0 : index
      %c0_24 = arith.constant 0 : index
      %44 = vector.load %arg8[%c0_23, %c0_24] : memref<2x128xf32, #tpu.memory_space<vmem>>, vector<2x128xf32>
      %45 = arith.mulf %44, %43 : vector<2x128xf32>
      %c0_25 = arith.constant 0 : index
      %c0_26 = arith.constant 0 : index
      %46 = vector.load %arg7[%c0_25, %c0_26] : memref<2x128xf32, #tpu.memory_space<vmem>>, vector<2x128xf32>
      tpu.vector_store %arg7[%c0_25, %c0_26], %45 {strides = array<i32>} : memref<2x128xf32, #tpu.memory_space<vmem>>, vector<2x128xf32>,
    } else {
    }
    return
  }
  func.func @transform_0(%arg0: i32, %arg1: i32) -> (i32, i32) {
    %c0_i32 = arith.constant 0 : i32
    %c0_i32_0 = arith.constant 0 : i32
    return %arg0, %c0_i32 : i32, i32
  }
  func.func @transform_1(%arg0: i32, %arg1: i32) -> (i32, i32) {
    %c0_i32 = arith.constant 0 : i32
    %c0_i32_0 = arith.constant 0 : i32
    return %arg0, %c0_i32 : i32, i32
  }
  func.func @transform_2(%arg0: i32, %arg1: i32) -> (i32, i32) {
    %c0_i32 = arith.constant 0 : i32
    %c0_i32_0 = arith.constant 0 : i32
    %c0_i32_1 = arith.constant 0 : i32
    return %c0_i32, %c0_i32_0 : i32, i32
  }
  func.func @transform_3(%arg0: i32, %arg1: i32) -> (i32, i32) {
    %c0_i32 = arith.constant 0 : i32
    %c0_i32_0 = arith.constant 0 : i32
    %c0_i32_1 = arith.constant 0 : i32
    return %c0_i32, %c0_i32_0 : i32, i32
  }
  func.func @transform_4(%arg0: i32, %arg1: i32) -> (i32, i32, i32) {
    %c0_i32 = arith.constant 0 : i32
    %c0_i32_0 = arith.constant 0 : i32
    return %arg0, %c0_i32, %arg1 : i32, i32, i32
  }
  func.func @transform_5(%arg0: i32, %arg1: i32) -> (i32, i32) {
    %c0_i32 = arith.constant 0 : i32
    %c0_i32_0 = arith.constant 0 : i32
    return %arg0, %c0_i32 : i32, i32
  }
}

</mosaic_0001>

<bundles_post_ra>
// kernel: decoder_step.1
= control target key start
LH: loop header
LB: loop body
LE: loop exit
PB: predicated region body
PF: predicated region fallthrough
CT: control target
= control target key end

     0   :  { %vm157_vm0 = vcmask 1024   ;;  %v865_v0 = vmov 0.0|0.0   ;;  %vm866_vm1 = vmmov 0   ;;  %v867_v4 = vmov 0.0   ;;  %s870_s11 = smov 32   ;;  %s872_s17 = smov 96   ;;  %s1028_s2 = inlined_call_operand.vmem [shape: f32[48,128], index: 2, kind: input, shape index: {}]   ;;  %s1029_s0 = inlined_call_operand.vmem [shape: f32[2,48], index: 0, kind: input, shape index: {}]   ;;  %s1030_s3 = inlined_call_operand.vmem [shape: f32[1,128], index: 3, kind: input, shape index: {}]   ;;  %s1031_s1 = inlined_call_operand.vmem [shape: f32[2,32], index: 1, kind: input, shape index: {}]   ;;  %s1032_s4 = inlined_call_operand.vmem [shape: f32[2,32,8], index: 4, kind: input, shape index: {}]   ;;  %s1033_s5 = inlined_call_operand.vmem [shape: f32[2,128], index: 5, kind: output, shape index: {}]  }
   0x1   :  { %812 = vmatprep.subr.bf16.mxu0 %v865_v0  ;;  %v25_v1 = vld [vmem:[%s1028_s2] sm:$0xff]  ;;  %v26_v2 = vld [vmem:[%s1028_s2 + $0x8] sm:$0xff]  ;;  %v27_v3 = vld [vmem:[%s1028_s2 + $0x10] sm:$0xff]  ;;  %771 = vmatprep.mubr.msk.f32.mxu0 %vm866_vm1, %v867_v4  ;;  %vm159_vm2 = vcmask 9224   ;;  %v868_v7 = vmov -inf   ;;  %vm38_vm3 = vcmask 392192   ;;  %v182_v40 = vlaneseq }
   0x2   :  { %v813_v5 = vpack.c.bf16 %v26_v2, %v25_v1  ;;  %v28_v6 = vld [vmem:[%s1028_s2 + $0x18] sm:$0xff]  ;;  %158 = vst.msk [vmem:[#allocation3] sm:$0x3] %vm157_vm0, %v868_v7  ;;  %821 = vmatprep.subr.bf16.mxu1 %v865_v0  ;;  %782 = vmatprep.mubr.msk.f32.mxu1 %vm866_vm1, %v867_v4  ;;  %v29_v9 = vld [vmem:[%s1028_s2 + $0x20] sm:$0xff]  ;;  %v30_v10 = vld [vmem:[%s1028_s2 + $0x28] sm:$0xff]  ;;  %s869_s2 = smov 64  }
   0x3   :  { %160 = vst.msk [vmem:[#allocation3] sm:$0x3] %vm159_vm2, %v867_v4  ;;  %v816_v8 = vpack.c.bf16 %v28_v6, %v27_v3  ;;  %v819_v11 = vpack.c.bf16 %v30_v10, %v29_v9  ;;  %v24_v12 = vld [vmem:[%s1029_s0] sm:$0x3]  ;;  %vm141_vm4 = vcmask 254976   ;;  %v955_v33 = vld [vmem:[%s1032_s4 + $0x8] sm:$0xff] }
   0x4   :  { %814 = vmatpush3.bf16.msra.mxu0 %v813_v5  ;;  %v718_v13 = vld [vmem:[%s1030_s3] ss:$0 sm:$0xff]  ;;  %142 = vst.msk [vmem:[#allocation2] sm:$0x3] %vm141_vm4, %v867_v4  ;;  %v960_v34 = vld [vmem:[%s1032_s4 + $0x10] sm:$0xff]  ;;  %v967_v36 = vld [vmem:[%s1032_s4 + $0x18] sm:$0xff] }
   0x5   :  { %815 = vmatprep.subr.bf16.mxu0 %v865_v0  ;;  %v119_v18 = vld [vmem:[%s1031_s1] sm:$0x3]  ;;  %v825_v37 = vpack.c.bf16 %v967_v36, %v960_v34  ;;  %vm147_vm5 = vcmask 517376   ;;  %vm153_vm6 = vcmask 779776   ;;  %v871_v38 = vmov 1966171168  }
   0x6   :  { %v950_v32 = vld [vmem:[%s1032_s4] sm:$0xff]  ;;  %v180_v39 = vunpack.c.l.s4 %v871_v38  ;;  %vm155_vm7 = vcmask 1042176   ;;  %v975_v44 = vshrl.u32 %v182_v40, 7  ;;  %v166_v54 = vld [vmem:[%s1032_s4 + $0x28] sm:$0xff]  ;;  %vm199_vm8 = vcmask 261120   ;;  %v167_v56 = vld [vmem:[%s1032_s4 + $0x30] sm:$0xff] }
   0x7   :  { %v822_v35 = vpack.c.bf16 %v955_v33, %v950_v32  ;;  %v165_v53 = vld [vmem:[%s1032_s4 + $0x20] sm:$0xff]  ;;  %v168_v57 = vld [vmem:[%s1032_s4 + $0x38] sm:$0xff]  ;;  %vm354_vm9 = vcmask 1041409   ;;  %vm357_vm10 = vcmask 58368   ;;  %v873_v6 = vmov 0   ;;  %s874_s4 = smov 127  }
   0x8   :  { %817 = vmatpush3.bf16.msra.mxu0 %v816_v8  ;;  %v181_v43 = vunpack.c.0.s8 %v180_v39  ;;  %v979_v46 = vsub.s32 0, %v975_v44  ;;  %v828_v55 = vpack.c.bf16 %v166_v54, %v165_v53  ;;  %v831_v59 = vpack.c.bf16 %v168_v57, %v167_v56  ;;  %845 = vset.pattern.permute.xlu1 %v873_v6  ;;  %s875_s26 = smov 1  }
   0x9   :  { %818 = vmatprep.subr.bf16.mxu0 %v865_v0  ;;  %823 = vmatpush3.bf16.msra.mxu1 %v822_v35  ;;  %vm414_vm11 = vcmask 64512   ;;  %vm659_vm12 = vcmask 130112   ;;  %vm666_vm13 = vcmask 195712   ;;  %vm673_vm14 = vcmask 261312  }
   0xa   :  { %824 = vmatprep.subr.bf16.mxu1 %v865_v0  ;;  %v184_v45 = vsub.s32 %v181_v43, %v975_v44  ;;  %846 = vset.pattern.permute.xlu0 %v873_v6 }
   0xc   :  { %820 = vmatpush3.bf16.msra.mxu0 %v819_v11 }
   0xd   :  { %826 = vmatpush3.bf16.msra.mxu1 %v825_v37 }
   0xe   :  { %827 = vmatprep.subr.bf16.mxu1 %v865_v0 }
   0xf   :  { %772 = vmatmul.mubr.msk.f32.vlgmr.msra.gmra.mrb[0].mxu0 %vm38_vm3, %v24_v12 }
  0x10   :  { %798 = vmatprep.mubr.msk.f32.mxu0 %vm414_vm11, %v950_v32 }
  0xe2   :  { %v108_v14 = vpop.f32.mrb[0].mxu0 }
  0xe3   :  { %v109_v15 = vadd.f32 %v718_v13, %v108_v14  ;;  %v773_v16 = vpop.f32.mrb[1].mxu0 }
  0xe5   :  { %849 = vtanh.f32 %v109_v15  ;;  %v720_v19 = vmul.f32 -1.442695, %v109_v15 }
  0xe7   :  { %851 = vpow2.f32 %v720_v19 }
  0xef   :  { %v850_v17 = vpop.eup %849 }
  0xf0   :  { %126 = vrot.lane.b32.xlu0 %v850_v17, %s869_s2 }
  0xf1   :  { %v852_v20 = vpop.eup %851 }
  0xf2   :  { %v115_v21 = vadd.f32 1.0, %v852_v20 }
  0xf4   :  { %121 = vrot.lane.b32.xlu0 %v119_v18, %s870_s11  ;;  %853 = vrcp.f32 %v115_v21 }
  0xfe   :  { %v854_v22 = vpop.eup %853 }
 0x162   :  { %v127_v23 = vpop.permute.xlu0 %126 }
 0x163   :  { %v129_v24 = vmul.f32 %v854_v22, %v127_v23 }
 0x165   :  { %131 = vrot.lane.b32.xlu1 %v129_v24, %s870_s11 }
 0x166   :  { %v122_v25 = vpop.permute.xlu0 %121 }
 0x167   :  { %v124_v26 = vmul.f32 %v854_v22, %v122_v25 }
 0x1d7   :  { %v132_v27 = vpop.permute.xlu1 %131 }
 0x1d8   :  { %v134_v28 = vadd.f32 %v132_v27, %v124_v26 }
 0x1da   :  { %855 = vtanh.f32 %v134_v28 }
 0x1e4   :  { %v856_v29 = vpop.eup %855 }
 0x1e5   :  { %137 = vrot.lane.b32.xlu1 %v856_v29, %s869_s2 }
 0x1e9   :  { %150 = vrot.lane.b32.xlu1 %v134_v28, %s870_s11 }
 0x257   :  { %v138_v30 = vpop.permute.xlu1 %137 }
 0x258   :  { %v140_v31 = vmul.f32 %v854_v22, %v138_v30 }
 0x25a   :  { %144 = vrot.lane.b32.xlu0 %v140_v31, %s869_s2 }
 0x25b   :  { %v151_v42 = vpop.permute.xlu1 %150 }
 0x2cc   :  { %v145_v41 = vpop.permute.xlu0 %144 }
 0x2cd   :  { %148 = vst.msk [vmem:[#allocation2] sm:$0x3] %vm147_vm5, %v145_v41 }
 0x2ce   :  { %154 = vst.msk [vmem:[#allocation2] sm:$0x3] %vm153_vm6, %v151_v42  ;;  %v876_v42 = vmov 1  }
 0x2cf   :  { %156 = vst.msk [vmem:[#allocation2] sm:$0x3] %vm155_vm7, %v867_v4 }
 0x2d6   :  { %v721_v47 = vld.sshfl [vmem:[#allocation2] sm:$0x11 pattern:$0x75316420] }
 0x2d7   :  { %v185_v48 = vrot.slane %v721_v47, %v184_v45  ;;  %v178_v49 = vcombine.high %v721_v47, %v721_v47 }
 0x2d9   :  { %v196_v50 = vrot.slane %v185_v48, %v979_v46  ;;  %v192_v51 = vrot.slane %v178_v49, %v184_v45  ;;  %v649_v45 = vand.u32 127, %v182_v40 }
 0x2db   :  { %197 = vrot.lane.b32.xlu0 %v196_v50, %s872_s17  ;;  %v275_v52 = vrot.slane %v192_v51, %v979_v46  ;;  %v661_v48 = vadd.s32 4294967280, %v649_v45  ;;  %v654_v49 = vadd.s32 4294967288, %v649_v45  ;;  %v668_v51 = vadd.s32 4294967272, %v649_v45 }
 0x2dc   :  { %vm704_vm15 = vcmp.lt.s32.totalorder %v649_v45, 32 }
 0x2dd   :  { %276 = vrot.lane.b32.xlu1 %v275_v52, %s872_s17 }
 0x34d   :  { %v198_v58 = vpop.permute.xlu0 %197 }
 0x34e   :  { %783 = vmatmul.mubr.msk.f32.vlgmr.msra.gmra.mrb[0].mxu1 %vm199_vm8, %v198_v58 }
 0x34f   :  { %829 = vmatpush3.bf16.msra.mxu1 %v828_v55  ;;  %793 = vmatprep.mubr.msk.f32.mxu1 %vm866_vm1, %v867_v4  ;;  %v277_v60 = vpop.permute.xlu1 %276  ;;  %v350_v4 = vld [vmem:[#allocation3] sm:$0x3]  ;;  %v657_v55 = vsub.s32 %v654_v49, %v975_v44 }
 0x350   :  { %830 = vmatprep.subr.bf16.mxu1 %v865_v0 }
 0x353   :  { %832 = vmatpush3.bf16.msra.mxu1 %v831_v59 }
 0x356   :  { %794 = vmatmul.mubr.msk.f32.vlgmr.msra.gmra.mrb[2].mxu1 %vm199_vm8, %v277_v60 }
 0x357   :  { %806 = vmatprep.mubr.msk.f32.mxu1 %vm414_vm11, %v165_v53  ;;  %v652_v53 = vsub.s32 %v649_v45, %v975_v44 }
 0x421   :  { %v268_v61 = vpop.f32.mrb[0].mxu1 }
 0x422   :  { %v784_v62 = vpop.f32.mrb[1].mxu1 }
 0x429   :  { %v346_v63 = vpop.f32.mrb[2].mxu1 }
 0x42a   :  { %v353_v1 = vrot.slane %v346_v63, 7  ;;  %v795_v2 = vpop.f32.mrb[3].mxu1 }
 0x42c   :  { %v355_v3 = vsel %vm354_vm9, %v353_v1, %v268_v61 }
 0x42d   :  { %v358_v5 = vsel %vm357_vm10, %v355_v3, -inf }
 0x42e   :  { %359 = vmax.xlane.f32.xlu0 %v358_v5 }
 0x444   :  { %379 = vrot.lane.b32.xlu0 %v350_v4, %s874_s4 }
 0x4bb   :  { %v360_v0 = vpop.xlane.xlu0 %359 }
 0x4bc   :  { %v361_v7 = vmax.f32 %v350_v4, %v360_v0 }
 0x4be   :  { %367 = vperm.xlu1 %845, %v361_v7   ;;  %v362_v23 = vsub.f32 %v350_v4, %v361_v7  ;;  %v609_v4 = vld [vmem:[#allocation2] sm:$0x3] }
 0x4bf   :  { %v380_v26 = vpop.permute.xlu0 %379 }
 0x4c0   :  { %v363_v24 = vmul.f32 1.442695, %v362_v23 }
 0x53d   :  { %v368_v8 = vpop.permute.xlu1 %367 }
 0x53e   :  { %v369_v9 = vrot.slane %v368_v8, 1  ;;  %v372_v10 = vsub.f32 %v268_v61, %v368_v8 }
 0x540   :  { %v373_v11 = vsub.f32 %v346_v63, %v369_v9  ;;  %v374_v12 = vmul.f32 1.442695, %v372_v10 }
 0x542   :  { %857 = vpow2.f32 %v374_v12  ;;  %v376_v13 = vmul.f32 1.442695, %v373_v11 }
 0x544   :  { %859 = vpow2.f32 %v376_v13 }
 0x545   :  { %861 = vpow2.f32 %v363_v24 }
 0x54c   :  { %v858_v14 = vpop.eup %857 }
 0x54d   :  { %v403_v15 = vrot.slane %v858_v14, %v979_v46 }
 0x54e   :  { %v860_v16 = vpop.eup %859 }
 0x54f   :  { %405 = vbcast.lane.b32.xlu1 %v403_v15, 256  ;;  %v385_v17 = vrot.slane %v860_v16, 7  ;;  %v410_v18 = vrot.slane %v860_v16, %v979_v46  ;;  %v862_v25 = vpop.eup %861 }
 0x550   :  { %v382_v27 = vmul.f32 %v862_v25, %v380_v26 }
 0x551   :  { %v386_v19 = vsel %vm354_vm9, %v385_v17, %v858_v14 }
 0x552   :  { %v388_v20 = vsel %vm357_vm10, %v386_v19, 0.0 }
 0x553   :  { %412 = vbcast.lane.b32.xlu1 %v410_v18, 256 }
 0x577   :  { %389 = vadd.xlane.f32.xlu1 %v388_v20 }
 0x5c1   :  { %v406_v21 = vpop.permute.xlu1 %405 }
 0x5c2   :  { %796 = vmatprep.subr.mxu0 %v406_v21 }
 0x5c3   :  { %797 = vmatpush3.msra.mxu0 %v406_v21 }
 0x5c4   :  { %799 = vmatmul.mubr.msk.f32.vlgmr.msra.gmra.mrb[2].mxu0 %vm414_vm11, %v955_v33 }
 0x5c5   :  { %v413_v22 = vpop.permute.xlu1 %412  ;;  %801 = vmatprep.mubr.msk.f32.mxu0 %vm414_vm11, %v960_v34 }
 0x5c6   :  { %804 = vmatprep.subr.mxu1 %v413_v22 }
 0x5c7   :  { %805 = vmatpush3.msra.mxu1 %v413_v22 }
 0x5c8   :  { %807 = vmatmul.mubr.msk.f32.vlgmr.msra.gmra.mrb[4].mxu1 %vm414_vm11, %v166_v54  ;;  %802 = vmatmul.mubr.msk.f32.gmra.mrb[4].mxu0 %vm414_vm11, %v967_v36  ;;  %v664_v54 = vsub.s32 %v661_v48, %v975_v44 }
 0x5c9   :  { %809 = vmatprep.mubr.msk.f32.mxu1 %vm414_vm11, %v167_v56 }
 0x5cc   :  { %810 = vmatmul.mubr.msk.f32.gmra.mrb[6].mxu1 %vm414_vm11, %v168_v57  ;;  %v671_v57 = vsub.s32 %v668_v51, %v975_v44 }
 0x604   :  { %v390_v28 = vpop.xlane.xlu1 %389 }
 0x605   :  { %v391_v29 = vadd.f32 %v390_v28, %v382_v27 }
 0x607   :  { %393 = vrot.lane.b32.xlu1 %v391_v29, %s875_s26 }
 0x679   :  { %v394_v30 = vpop.permute.xlu1 %393 }
 0x67a   :  { %397 = vst.msk [vmem:[#allocation3] sm:$0x3] %vm159_vm2, %v394_v30 }
 0x67b   :  { %399 = vst.msk [vmem:[#allocation3] sm:$0x3] %vm157_vm0, %v361_v7 }
 0x682   :  { %v702_v37 = vld [vmem:[#allocation3] sm:$0x3] }
 0x683   :  { %863 = vrcp.f32 %v702_v37 }
 0x68d   :  { %v864_v41 = vpop.eup %863 }
 0x697   :  { %v800_v31 = vpop.f32.mrb[2].mxu0 }
 0x698   :  { %628 = vperm.xlu0 %846, %v800_v31   ;;  %v493_v32 = vpop.f32.mrb[3].mxu0 }
 0x69b   :  { %v808_v33 = vpop.f32.mrb[4].mxu1  ;;  %v803_v34 = vpop.f32.mrb[4].mxu0 }
 0x69c   :  { %640 = vperm.xlu1 %845, %v808_v33   ;;  %625 = vperm.xlu0 %846, %v493_v32   ;;  %v590_v35 = vpop.f32.mrb[5].mxu1  ;;  %v503_v36 = vpop.f32.mrb[5].mxu0 }
 0x69f   :  { %v811_v38 = vpop.f32.mrb[6].mxu1 }
 0x6a0   :  { %v600_v39 = vpop.f32.mrb[7].mxu1  ;;  %637 = vperm.xlu0 %846, %v590_v35  }
 0x6a1   :  { %643 = vperm.xlu1 %845, %v600_v39  }
 0x6a4   :  { %634 = vperm.xlu0 %846, %v803_v34  }
 0x6a5   :  { %646 = vperm.xlu1 %845, %v811_v38  }
 0x6a8   :  { %631 = vperm.xlu0 %846, %v503_v36  }
 0x6a9   :  { %847 = vset.pattern.permute.xlu1 %v876_v42 }
 0x6aa   :  { %707 = vperm.xlu1 %847, %v864_v41  }
 0x6ac   :  { %612 = vperm.xlu0 %846, %v862_v25  }
 0x6b0   :  { %848 = vset.pattern.permute.xlu0 %v876_v42 }
 0x717   :  { %v629_v43 = vpop.permute.xlu0 %628 }
 0x718   :  { %v658_v62 = vrot.slane %v629_v43, %v657_v55 }
 0x71b   :  { %v641_v46 = vpop.permute.xlu1 %640  ;;  %v626_v47 = vpop.permute.xlu0 %625 }
 0x71c   :  { %v682_v60 = vrot.slane %v641_v46, %v657_v55  ;;  %v653_v40 = vrot.slane %v626_v47, %v652_v53 }
 0x71e   :  { %v660_v5 = vsel %vm659_vm12, %v658_v62, %v653_v40 }
 0x71f   :  { %v638_v50 = vpop.permute.xlu0 %637 }
 0x720   :  { %v644_v52 = vpop.permute.xlu1 %643  ;;  %v678_v56 = vrot.slane %v638_v50, %v652_v53 }
 0x721   :  { %v687_v61 = vrot.slane %v644_v52, %v664_v54 }
 0x722   :  { %v683_v63 = vsel %vm659_vm12, %v682_v60, %v678_v56 }
 0x723   :  { %v635_v58 = vpop.permute.xlu0 %634  ;;  %v688_v0 = vsel %vm666_vm13, %v687_v61, %v683_v63 }
 0x724   :  { %v647_v59 = vpop.permute.xlu1 %646  ;;  %v672_v6 = vrot.slane %v635_v58, %v671_v57 }
 0x725   :  { %v692_v1 = vrot.slane %v647_v59, %v671_v57 }
 0x727   :  { %v632_v2 = vpop.permute.xlu0 %631  ;;  %v693_v8 = vsel %vm673_vm14, %v692_v1, %v688_v0 }
 0x728   :  { %v665_v3 = vrot.slane %v632_v2, %v664_v54 }
 0x729   :  { %v708_v13 = vpop.permute.xlu1 %707 }
 0x72a   :  { %v667_v7 = vsel %vm666_vm13, %v665_v3, %v660_v5  ;;  %v710_v14 = vsel %vm704_vm15, %v708_v13, 1.0 }
 0x72b   :  { %v674_v44 = vsel %vm673_vm14, %v672_v6, %v667_v7  ;;  %v613_v9 = vpop.permute.xlu0 %612 }
 0x72c   :  { %v694_v10 = vsel %vm354_vm9, %v693_v8, %v674_v44  ;;  %v615_v11 = vmul.f32 %v613_v9, %v609_v4 }
 0x72e   :  { %v696_v12 = vadd.f32 %v694_v10, %v615_v11 }
 0x730   :  { %698 = vst.msk [vmem:[#allocation2] sm:$0x3] %vm141_vm4, %v696_v12 }
 0x737   :  { %v711_v15 = vld [vmem:[#allocation2] sm:$0x3] }
 0x738   :  { %v712_v16 = vmul.f32 %v711_v15, %v710_v14 }
 0x73a   :  { %713 = vst [vmem:[%s1033_s5] sm:$0x3] %v712_v16 }

</bundles_post_ra>
